<compile_context>
chip_gen: v6e
topology: v6e:2x2x1
jax: 0.10.0
libtpu: 0.0.40
codegen_flags: <defaults>
</compile_context>

<pallas_src>
import functools

import jax
import jax.numpy as jnp
from jax.experimental import pallas as pl
from jax.experimental.pallas import tpu as pltpu


def _round_up(v: int, m: int) -> int:
    return ((v + m - 1) // m) * m


def _tile_dims(num_nodes: int):
    """Return (n_pad, tm) with n_pad % tm == 0 and tm a multiple of 8."""
    n8 = _round_up(num_nodes, 8)
    tm = min(256, n8)          # row tile of A / output
    return _round_up(n8, tm), tm


# ----------------------------------------------------------------------------
# Pallas kernel: one RGCN layer.
#   grid = (row_tiles [parallel], relations [arbitrary / reduction])
#   out[i] = x[i] @ root + bias + sum_r A_r[i, :] @ XW_r
# ----------------------------------------------------------------------------
def _rgcn_layer_kernel(a_ref, xw_ref, x_ref, root_ref, bias_ref, o_ref):
    r = pl.program_id(1)

    @pl.when(r == 0)
    def _():
        # self-loop (root) transform + bias: once per row tile.
        o_ref[...] = (
            jnp.dot(x_ref[...], root_ref[...], preferred_element_type=jnp.float32)
            + bias_ref[...]
        )

    # mean-aggregated messages of relation r for this row tile.
    # o_ref (f32, resident across the relation axis) is the accumulator.
    o_ref[...] += jnp.dot(a_ref[...], xw_ref[r],
                          preferred_element_type=jnp.float32)


def rgcn_layer(adj, xw, x, root, bias, *, tm):
    """adj: [R, Np, Np] bf16, xw: [R, Np, Cop] bf16, x: [Np, Cip] bf16,
    root: [Cip, Cop] bf16, bias: [Cop] f32  ->  [Np, Cop] f32."""
    num_rel, n_pad, _ = adj.shape
    c_in_pad = x.shape[1]
    c_out_pad = xw.shape[-1]
    assert n_pad % tm == 0
    grid_rows = n_pad // tm
    bias2d = bias.reshape(1, c_out_pad)

    flops = 2 * num_rel * n_pad * n_pad * c_out_pad + 2 * n_pad * c_in_pad * c_out_pad
    bytes_accessed = (adj.size * 2 + xw.size * 2 + x.size * 2
                      + root.size * 2 + bias2d.size * 4 + n_pad * c_out_pad * 4)

    return pl.pallas_call(
        _rgcn_layer_kernel,
        out_shape=jax.ShapeDtypeStruct((n_pad, c_out_pad), jnp.float32),
        grid_spec=pltpu.PrefetchScalarGridSpec(
            num_scalar_prefetch=0,
            grid=(grid_rows, num_rel),
            in_specs=[
                # A_r row tile: (tm, Np), streamed and pipelined per grid step.
                pl.BlockSpec((None, tm, n_pad), lambda i, r: (r, i, 0)),
                # XW (all relations): resident in VMEM, DMA'd once.
                pl.BlockSpec((num_rel, n_pad, c_out_pad), lambda i, r: (0, 0, 0)),
                # x row tile for the root/self transform (re-DMA only on i change).
                pl.BlockSpec((tm, c_in_pad), lambda i, r: (i, 0)),
                # root weight + bias: resident.
                pl.BlockSpec((c_in_pad, c_out_pad), lambda i, r: (0, 0)),
                pl.BlockSpec((1, c_out_pad), lambda i, r: (0, 0)),
            ],
            out_specs=pl.BlockSpec((tm, c_out_pad), lambda i, r: (i, 0)),
        ),
        compiler_params=pltpu.CompilerParams(
            dimension_semantics=("parallel", "arbitrary"),
            vmem_limit_bytes=48 * 1024 * 1024,
        ),
        cost_estimate=pl.CostEstimate(
            flops=flops, transcendentals=0, bytes_accessed=bytes_accessed),
    )(adj, xw, x, root, bias2d)


# ----------------------------------------------------------------------------
# Glue: adjacency construction, parameter init, multi-layer forward.
# ----------------------------------------------------------------------------
def build_norm_adjacency(edge_index, edge_type, num_nodes, num_relations):
    """Dense per-relation adjacency, mean-normalized over incoming edges
    (per-relation in-degree, matching PyG RGCNConv's per-relation aggr='mean')."""
    src, dst = edge_index[0], edge_index[1]
    a = jnp.zeros((num_relations, num_nodes, num_nodes), jnp.float32)
    a = a.at[edge_type, dst, src].add(1.0)
    deg = a.sum(axis=2, keepdims=True)
    return a / jnp.maximum(deg, 1.0)     # rows with deg=0 stay 0


def init_rgcn_params(key, num_relations, hidden_dim, out_channels, num_layers,
                     num_bases=2):
    params = []
    for layer in range(num_layers):
        c_in = hidden_dim
        c_out = hidden_dim if layer < num_layers - 1 else out_channels
        key, k1, k2, k3 = jax.random.split(key, 4)
        bases = jax.random.normal(k1, (num_bases, c_in, c_out), jnp.float32)
        bases = bases * (1.0 / jnp.sqrt(jnp.float32(c_in)))
        comp = jax.random.normal(k2, (num_relations, num_bases), jnp.float32)
        comp = comp * (1.0 / jnp.sqrt(jnp.float32(num_bases)))
        root = jax.random.normal(k3, (c_in, c_out), jnp.float32)
        root = root * (1.0 / jnp.sqrt(jnp.float32(c_in)))
        bias = jnp.zeros((c_out,), jnp.float32)
        params.append(dict(bases=bases, comp=comp, root=root, bias=bias))
    return params


def _pad_layer_params(p):
    """Zero-pad bases/root/bias channel dims to multiples of 128 (lane-dense)."""
    bases, root, bias = p["bases"], p["root"], p["bias"]
    c_in, c_out = root.shape
    c_in_pad, c_out_pad = _round_up(c_in, 128), _round_up(c_out, 128)
    bases_p = jnp.pad(bases, ((0, 0), (0, c_in_pad - c_in), (0, c_out_pad - c_out)))
    root_p = jnp.pad(root, ((0, c_in_pad - c_in), (0, c_out_pad - c_out)))
    bias_p = jnp.pad(bias, ((0, c_out_pad - c_out),))
    return bases_p, p["comp"], root_p, bias_p


def _layer_xw(xp, comp, bases_p):
    """XW_r = x @ W_r for every relation, via the basis decomposition."""
    xb = jnp.einsum("nc,bco->bno", xp, bases_p)            # B small matmuls (f32)
    return jnp.einsum("rb,bno->rno", comp, xb).astype(jnp.bfloat16)


@functools.partial(jax.jit, static_argnames=("num_relations", "out_channels"))
def rgcn_forward(params, x, edge_index, edge_type, num_relations, out_channels):
    n, c0 = x.shape
    n_pad, tm = _tile_dims(n)

    adj = build_norm_adjacency(edge_index, edge_type, n, num_relations)
    adj = jnp.pad(adj, ((0, 0), (0, n_pad - n), (0, n_pad - n))).astype(jnp.bfloat16)

    xp = jnp.pad(x, ((0, n_pad - n), (0, _round_up(c0, 128) - c0)))   # f32, padded
    for p in params:
        bases_p, comp, root_p, bias_p = _pad_layer_params(p)
        xw = _layer_xw(xp, comp, bases_p)
        xp = rgcn_layer(adj, xw, xp.astype(jnp.bfloat16),
                        root_p.astype(jnp.bfloat16), bias_p, tm=tm)
    return xp[:n, :out_channels]


def rgcn_forward_ref(params, x, edge_index, edge_type, num_relations, out_channels):
    """Pure-JAX reference with the same padding / bf16 casts (no Pallas)."""
    n, c0 = x.shape
    n_pad, _ = _tile_dims(n)
    adj = build_norm_adjacency(edge_index, edge_type, n, num_relations)
    adj = jnp.pad(adj, ((0, 0), (0, n_pad - n), (0, n_pad - n))).astype(jnp.bfloat16)
    xp = jnp.pad(x, ((0, n_pad - n), (0, _round_up(c0, 128) - c0)))
    for p in params:
        bases_p, comp, root_p, bias_p = _pad_layer_params(p)
        xw = _layer_xw(xp, comp, bases_p)
        msg = jnp.einsum("rij,rjo->io", adj, xw,
                         preferred_element_type=jnp.float32)
        self_t = jnp.dot(xp.astype(jnp.bfloat16), root_p.astype(jnp.bfloat16),
                         preferred_element_type=jnp.float32) + bias_p[None, :]
        xp = msg + self_t
    return xp[:n, :out_channels]


if __name__ == "__main__":
    # Small, deterministic problem consistent with the module's forward:
    # x: [N, hidden_dim], edge_index: [2, E], edge_type: [E]
    num_nodes = 16
    hidden_dim = 32
    num_relations = 3
    num_layers = 3
    out_channels = 1
    num_edges = 40

    key = jax.random.PRNGKey(0)
    k_x, k_src, k_dst, k_type, k_params = jax.random.split(key, 5)

    x = jax.random.normal(k_x, (num_nodes, hidden_dim), jnp.float32)
    edge_index = jnp.stack(
        [
            jax.random.randint(k_src, (num_edges,), 0, num_nodes),
            jax.random.randint(k_dst, (num_edges,), 0, num_nodes),
        ],
        axis=0,
    )
    edge_type = jax.random.randint(k_type, (num_edges,), 0, num_relations)

    params = init_rgcn_params(
        k_params, num_relations, hidden_dim, out_channels, num_layers
    )

    out = rgcn_forward(params, x, edge_index, edge_type, num_relations, out_channels)
    out = jax.block_until_ready(out)

    ref = rgcn_forward_ref(params, x, edge_index, edge_type, num_relations,
                           out_channels)
    assert out.shape == (num_nodes, out_channels)
    # bf16 inputs (f32 accumulation) -> allow ~1e-2 relative deviation.
    assert jnp.allclose(out, ref, atol=2e-2, rtol=2e-2), "mismatch vs reference"

    print("KERNEL_OK")
</pallas_src>

<mosaic_0001>
module attributes {stable_mosaic.version = 11 : i64} {
  func.func private @main(%arg0: i32) attributes {dimension_semantics = [#tpu.dimension_semantics<core_parallel>], iteration_bounds = array<i64: 2>, tpu.core_type = #tpu.core_type<sc_scalar_subcore>, window_params = []} {
    return
  }
}

module attributes {stable_mosaic.version = 11 : i64} {
  func.func private @main(%arg0: i32) attributes {dimension_semantics = [#tpu.dimension_semantics<core_parallel>], iteration_bounds = array<i64: 2>, tpu.core_type = #tpu.core_type<sc_scalar_subcore>, window_params = []} {
    return
  }
}

module attributes {stable_mosaic.version = 11 : i64} {
  func.func @_rgcn_layer_kernel(%arg0: i32, %arg1: i32, %arg2: memref<1x16x16xbf16, #tpu.memory_space<vmem>>, %arg3: memref<3x16x128xbf16, #tpu.memory_space<vmem>>, %arg4: memref<16x128xbf16, #tpu.memory_space<vmem>>, %arg5: memref<128x128xbf16, #tpu.memory_space<vmem>>, %arg6: memref<1x128xf32, #tpu.memory_space<vmem>>, %arg7: memref<16x128xf32, #tpu.memory_space<vmem>>) attributes {dimension_semantics = [#tpu.dimension_semantics<parallel>, #tpu.dimension_semantics<arbitrary>], iteration_bounds = array<i64: 1, 3>, scalar_prefetch = 0 : i64, scratch_operands = 0 : i64, tpu.core_type = #tpu.core_type<tc>, window_params = [{transform_indices = @transform_0, window_bounds = array<i64: 1, 16, 16>}, {pipeline_mode = #tpu.pipeline_mode<synchronous>, transform_indices = @transform_1, window_bounds = array<i64: 3, 16, 128>}, {transform_indices = @transform_2, window_bounds = array<i64: 16, 128>}, {pipeline_mode = #tpu.pipeline_mode<synchronous>, transform_indices = @transform_3, window_bounds = array<i64: 128, 128>}, {pipeline_mode = #tpu.pipeline_mode<synchronous>, transform_indices = @transform_4, window_bounds = array<i64: 1, 128>}, {transform_indices = @transform_5, window_bounds = array<i64: 16, 128>}]} {
    %c0_i32 = arith.constant 0 : i32
    %0 = arith.cmpi eq, %arg1, %c0_i32 : i32
    %1 = arith.extui %0 : i1 to i32
    %c0_i32_0 = arith.constant 0 : i32
    %2 = arith.cmpi ne, %1, %c0_i32_0 : i32
    scf.if %2 {
      %c0_9 = arith.constant 0 : index
      %c0_10 = arith.constant 0 : index
      %12 = vector.load %arg4[%c0_9, %c0_10] : memref<16x128xbf16, #tpu.memory_space<vmem>>, vector<16x128xbf16>
      %c0_11 = arith.constant 0 : index
      %c0_12 = arith.constant 0 : index
      %13 = vector.load %arg5[%c0_11, %c0_12] : memref<128x128xbf16, #tpu.memory_space<vmem>>, vector<128x128xbf16>
      %cst_13 = arith.constant dense<0.000000e+00> : vector<16x128xf32>
      %14 = tpu.matmul %12, %13, %cst_13 {dimension_numbers = #tpu.dot_dimension_numbers<[1], [0], [0], [1], [0, 0, 1, 1], [], []>} : vector<16x128xbf16>, vector<128x128xbf16>, vector<16x128xf32> -> vector<16x128xf32>
      %c0_14 = arith.constant 0 : index
      %c0_15 = arith.constant 0 : index
      %15 = vector.load %arg6[%c0_14, %c0_15] : memref<1x128xf32, #tpu.memory_space<vmem>>, vector<1x128xf32>
      %16 = vector.broadcast %15 : vector<1x128xf32> to vector<16x128xf32>
      %17 = arith.addf %14, %16 : vector<16x128xf32>
      %c0_16 = arith.constant 0 : index
      %c0_17 = arith.constant 0 : index
      %18 = vector.load %arg7[%c0_16, %c0_17] : memref<16x128xf32, #tpu.memory_space<vmem>>, vector<16x128xf32>
      tpu.vector_store %arg7[%c0_16, %c0_17], %17 {strides = array<i32>} : memref<16x128xf32, #tpu.memory_space<vmem>>, vector<16x128xf32>,
    } else {
    }
    %c0 = arith.constant 0 : index
    %c0_1 = arith.constant 0 : index
    %3 = vector.load %arg7[%c0, %c0_1] : memref<16x128xf32, #tpu.memory_space<vmem>>, vector<16x128xf32>
    %c0_2 = arith.constant 0 : index
    %c0_3 = arith.constant 0 : index
    %c0_4 = arith.constant 0 : index
    %4 = vector.load %arg2[%c0_2, %c0_3, %c0_4] : memref<1x16x16xbf16, #tpu.memory_space<vmem>>, vector<1x16x16xbf16>
    %5 = vector.shape_cast %4 : vector<1x16x16xbf16> to vector<16x16xbf16>
    %6 = arith.index_cast %arg1 : i32 to index
    %c0_5 = arith.constant 0 : index
    %c0_6 = arith.constant 0 : index
    %7 = vector.load %arg3[%6, %c0_5, %c0_6] : memref<3x16x128xbf16, #tpu.memory_space<vmem>>, vector<1x16x128xbf16>
    %8 = vector.shape_cast %7 : vector<1x16x128xbf16> to vector<16x128xbf16>
    %cst = arith.constant dense<0.000000e+00> : vector<16x128xf32>
    %9 = tpu.matmul %5, %8, %cst {dimension_numbers = #tpu.dot_dimension_numbers<[1], [0], [0], [1], [0, 0, 1, 1], [], []>} : vector<16x16xbf16>, vector<16x128xbf16>, vector<16x128xf32> -> vector<16x128xf32>
    %10 = arith.addf %3, %9 : vector<16x128xf32>
    %c0_7 = arith.constant 0 : index
    %c0_8 = arith.constant 0 : index
    %11 = vector.load %arg7[%c0_7, %c0_8] : memref<16x128xf32, #tpu.memory_space<vmem>>, vector<16x128xf32>
    tpu.vector_store %arg7[%c0_7, %c0_8], %10 {strides = array<i32>} : memref<16x128xf32, #tpu.memory_space<vmem>>, vector<16x128xf32>,
    return
  }
  func.func @transform_0(%arg0: i32, %arg1: i32) -> (i32, i32, i32) {
    %c0_i32 = arith.constant 0 : i32
    %c0_i32_0 = arith.constant 0 : i32
    return %arg1, %arg0, %c0_i32 : i32, i32, i32
  }
  func.func @transform_1(%arg0: i32, %arg1: i32) -> (i32, i32, i32) {
    %c0_i32 = arith.constant 0 : i32
    %c0_i32_0 = arith.constant 0 : i32
    %c0_i32_1 = arith.constant 0 : i32
    %c0_i32_2 = arith.constant 0 : i32
    return %c0_i32, %c0_i32_0, %c0_i32_1 : i32, i32, i32
  }
  func.func @transform_2(%arg0: i32, %arg1: i32) -> (i32, i32) {
    %c0_i32 = arith.constant 0 : i32
    %c0_i32_0 = arith.constant 0 : i32
    return %arg0, %c0_i32 : i32, i32
  }
  func.func @transform_3(%arg0: i32, %arg1: i32) -> (i32, i32) {
    %c0_i32 = arith.constant 0 : i32
    %c0_i32_0 = arith.constant 0 : i32
    %c0_i32_1 = arith.constant 0 : i32
    return %c0_i32, %c0_i32_0 : i32, i32
  }
  func.func @transform_4(%arg0: i32, %arg1: i32) -> (i32, i32) {
    %c0_i32 = arith.constant 0 : i32
    %c0_i32_0 = arith.constant 0 : i32
    %c0_i32_1 = arith.constant 0 : i32
    return %c0_i32, %c0_i32_0 : i32, i32
  }
  func.func @transform_5(%arg0: i32, %arg1: i32) -> (i32, i32) {
    %c0_i32 = arith.constant 0 : i32
    %c0_i32_0 = arith.constant 0 : i32
    return %arg0, %c0_i32 : i32, i32
  }
}

</mosaic_0001>

<bundles_post_ra>
// kernel: rgcn_forward.3
= control target key start
LH: loop header
LB: loop body
LE: loop exit
PB: predicated region body
PF: predicated region fallthrough
CT: control target
= control target key end

     0   :  { %s720_s18 = smov 0   ;;  %s722_s19 = smov 0   ;;  %s810_s0 = inlined_call_operand.vmem [shape: bf16[3,16,16], index: 0, kind: input, shape index: {}]   ;;  %s811_s1 = inlined_call_operand.vmem [shape: bf16[3,16,128], index: 1, kind: input, shape index: {}]   ;;  %s812_s2 = inlined_call_operand.vmem [shape: bf16[16,128], index: 2, kind: input, shape index: {}]   ;;  %s813_s3 = inlined_call_operand.vmem [shape: bf16[128,128], index: 3, kind: input, shape index: {}]   ;;  %s814_s4 = inlined_call_operand.vmem [shape: f32[1,128], index: 4, kind: input, shape index: {}]   ;;  %s815_s5 = inlined_call_operand.vmem [shape: f32[16,128], index: 5, kind: output, shape index: {}]  }
   0x1   :  { %s724_s20 = smov 0  }
   0x2 LB: > { %s24_s21 = sadd.s32 1, %s680_s19  ;;  %p561_p0 = scmp.ge.s32.totalorder %s684_s20, 1  ;;  %s684_s20 = sphi %s724_s20, %s15_s20   ;;  %s680_s19 = sphi %s722_s19, %s817_s19   ;;  %s676_s18 = sphi %s720_s18, %s816_s18  }
   0x3   : > { %p25_p1 = scmp.ge.s32.totalorder %s24_s21, 3  ;;  %p217_p2 = scmp.lt.s32.totalorder %s684_s20, 4 }
   0x5   : > { %s819_s21 = smov (%p25_p1, %s24_s21), 0  ;;  %p218_p3 = pnand %p561_p0, %p217_p2 }
   0x6   : > { %p255_p4 = scmp.lt.s32.totalorder (!%p218_p3), %s676_s18, 2  ;;  %p564_p5 = scmp.ne.s32.totalorder (!%p218_p3), %s676_s18, 0 }
   0x7   : > { %221 = sbr.rel (%p218_p3) target bundleno = 457 (0x1c9), region = 40 }
   0xc   : > { %s256_s22 = scalar_select %p255_p4, %s676_s18, 2 }
   0xd   : > { %280 = sbr.rel (%p564_p5) target bundleno = 251 (0xfb), region = 44 }
   0xe   : > { %s584_s23 = sshll.u32 %s256_s22, 3 }
   0xf   : > { %s745_s26 = scalar_lea.vmem %s810_s0, %s584_s23 }
  0x12   : > { %v651_v0 = vld [vmem:[%s813_s3 + $0x38] sm:$0xff]   ;;  %v686_v1 = vmov 0.0   ;;  %v652_v2 = vld [vmem:[%s813_s3 + $0x30] sm:$0xff]   ;;  %vm687_vm0 = vmmov 0   ;;  %v653_v3 = vld [vmem:[%s813_s3 + $0x28] sm:$0xff]  }
  0x13   : > { %597 = vmatprep.subr.bf16.mxu0 %v686_v1  ;;  %613 = vmatprep.mubr.msk.bf16.mxu0 %vm687_vm0, %v686_v1  ;;  %v654_v4 = vld [vmem:[%s813_s3 + $0x20] sm:$0xff]   ;;  %v655_v5 = vld [vmem:[%s813_s3 + $0x18] sm:$0xff]   ;;  %v656_v6 = vld [vmem:[%s813_s3 + $0x10] sm:$0xff]  }
  0x14   : > { %598 = vmatpush3.bf16.msra.mxu0 %v651_v0  ;;  %v657_v7 = vld [vmem:[%s813_s3 + $0x8] sm:$0xff]   ;;  %v658_v8 = vld [vmem:[%s813_s3] sm:$0xff]  }
  0x15   : > { %599 = vmatprep.subr.bf16.mxu0 %v686_v1  ;;  %v659_v9 = vld [vmem:[%s812_s2] sm:$0xff]  }
  0x16   : > { %v565_v10 = vld [vmem:[%s814_s4] ss:$0 sm:$0xff] }
  0x18   : > { %600 = vmatpush3.bf16.msra.mxu0 %v652_v2 }
  0x19   : > { %601 = vmatprep.subr.bf16.mxu0 %v686_v1 }
  0x1c   : > { %602 = vmatpush3.bf16.msra.mxu0 %v653_v3 }
  0x1d   : > { %603 = vmatprep.subr.bf16.mxu0 %v686_v1 }
  0x20   : > { %604 = vmatpush3.bf16.msra.mxu0 %v654_v4 }
  0x21   : > { %605 = vmatprep.subr.bf16.mxu0 %v686_v1 }
  0x24   : > { %606 = vmatpush3.bf16.msra.mxu0 %v655_v5 }
  0x25   : > { %607 = vmatprep.subr.bf16.mxu0 %v686_v1 }
  0x28   : > { %608 = vmatpush3.bf16.msra.mxu0 %v656_v6 }
  0x29   : > { %609 = vmatprep.subr.bf16.mxu0 %v686_v1 }
  0x2c   : > { %610 = vmatpush3.bf16.msra.mxu0 %v657_v7 }
  0x2d   : > { %611 = vmatprep.subr.bf16.mxu0 %v686_v1 }
  0x30   : > { %612 = vmatpush3.bf16.msra.mxu0 %v658_v8 }
  0x33   : > { %614 = vmatmul.mubr.bf16.vlgmr.msra.gmra.mxu0 %v659_v9 }
  0xf3   : > { %v394_v11 = vpop.f32.mrf.mxu0 }
  0xf4   : > { %v395_v12 = vadd.f32 %v565_v10, %v394_v11 }
  0xf5   : > { %v615_v13 = vpop.f32.mrf.mxu0 }
  0xf6   : > { %401 = vst [vmem:[%s815_s5] sm:$0xff] %v395_v12 }
  0xf7   : > { %v397_v14 = vpop.f32.mrf.mxu0 }
  0xf8   : > { %v398_v15 = vadd.f32 %v565_v10, %v397_v14 }
  0xf9   : > { %v616_v16 = vpop.f32.mrf.mxu0 }
  0xfa   : > { %402 = vst [vmem:[%s815_s5 + $0x8] sm:$0xff] %v398_v15 }
  0xfb PF: > { %s585_s6 = sshll.u32 %s676_s18, 3  ;;  %v688_v17 = vmov 0.0   ;;  %vm689_vm1 = vmmov 0   ;;  %v661_v19 = vld [vmem:[%s745_s26] sm:$0xff]   ;;  %vm423_vm2 = vcmask 130048  }
  0xfc   : > { %617 = vmatprep.subr.bf16.mxu0 %v688_v17  ;;  %s409_s9 = scalar_lea.vmem %s811_s1, %s585_s6  ;;  %619 = vmatprep.mubr.msk.bf16.mxu0 %vm689_vm1, %v688_v17 }
  0xfd   : > { %v660_v18 = vld [vmem:[%s409_s9] sm:$0xff]  }
  0xfe   : > { %618 = vmatpush3.bf16.msra.mxu0 %v660_v18  ;;  %v403_v20 = vld [vmem:[%s815_s5] sm:$0xff] }
 0x101   : > { %620 = vmatmul.mubr.msk.bf16.vlgmr.msra.gmra.mxu0 %vm423_vm2, %v661_v19  ;;  %v404_v24 = vld [vmem:[%s815_s5 + $0x8] sm:$0xff] }
 0x1c1   : > { %v461_v21 = vpop.f32.mrf.mxu0 }
 0x1c2   : > { %v468_v22 = vadd.f32 %v461_v21, %v403_v20 }
 0x1c3   : > { %v621_v23 = vpop.f32.mrf.mxu0 }
 0x1c4   : > { %470 = vst [vmem:[%s815_s5] sm:$0xff] %v468_v22 }
 0x1c5   : > { %v464_v25 = vpop.f32.mrf.mxu0 }
 0x1c6   : > { %v469_v26 = vadd.f32 %v464_v25, %v404_v24 }
 0x1c7   : > { %v622_v27 = vpop.f32.mrf.mxu0 }
 0x1c8   : > { %471 = vst [vmem:[%s815_s5 + $0x8] sm:$0xff] %v469_v26 }
 0x1c9 PF: > { %s15_s20 = sadd.s32 1, %s684_s20   ;;  %s816_s18 = smov %s680_s19 }
 0x1ca   : > { %p12_p6 = scmp.ge.s32.totalorder %s15_s20, 5   ;;  %s817_s19 = smov %s819_s21 }
 0x1cc   :  { %14 = sbr.rel (!%p12_p6) target bundleno = 2 (0x2), region = 78 }

</bundles_post_ra>
